<compile_context>
chip_gen: v7x
topology: tpu7x:2x2x1
jax: 0.10.0
libtpu: 0.0.40
codegen_flags: <defaults>
</compile_context>

<pallas_src>
import jax
import jax.numpy as jnp
from jax.experimental import pallas as pl
from jax.experimental.pallas import tpu as pltpu

LANE = 128     # lane (last-dim) tiling
SUBLANE = 8    # sublane (second-to-last-dim) tiling


def _round_up(n, m):
    return ((n + m - 1) // m) * m


def mlp_kernel(x_ref, w1_ref, b1_ref, w2_ref, b2_ref, w3_ref, b3_ref,
               w4_ref, b4_ref, o_ref):
    """y = relu(relu(relu(x@W1+b1)@W2+b2)@W3+b3)@W4+b4, fully fused in VMEM.

    Matmuls run on the MXU in bf16 with f32 accumulation; bias add in f32;
    ReLU in bf16.  Only the true output columns are stored (padded weight
    columns / bias entries are exactly zero anyway).
    """
    h = x_ref[...]                                                     # (tb, d_in) bf16
    h = jnp.dot(h, w1_ref[...], preferred_element_type=jnp.float32) + b1_ref[...]
    h = jnp.maximum(h.astype(jnp.bfloat16), 0.0)                       # (tb, 128) bf16
    h = jnp.dot(h, w2_ref[...], preferred_element_type=jnp.float32) + b2_ref[...]
    h = jnp.maximum(h.astype(jnp.bfloat16), 0.0)                       # (tb, 128) bf16
    h = jnp.dot(h, w3_ref[...], preferred_element_type=jnp.float32) + b3_ref[...]
    h = jnp.maximum(h.astype(jnp.bfloat16), 0.0)                       # (tb, 128) bf16
    y = jnp.dot(h, w4_ref[...], preferred_element_type=jnp.float32) + b4_ref[...]
    o_ref[...] = y[:, : o_ref.shape[1]]                                # (tb, d_out) f32


def prepare_params(params):
    """One-time weight preparation (hoisted out of the per-call path).

    params: [(W, b), ...] in PyTorch nn.Linear layout, W: (out, in), b: (out,).
    Returns (tensors, d_out):
      tensors = (W1', b1', ..., W4', b4') with W' = pad(W.T) in (in, out) layout,
      bf16, hidden/output dims zero-padded to multiples of 128 lanes; b' is a
      (1, pout) f32 row.  The first layer's input dim (and the batch dim) are
      NOT padded.  Zero padding is exact for this MLP (padded rows/cols/biases
      are zero and relu(0) = 0).
    """
    d_out = params[-1][0].shape[0]
    tensors = []
    for li, (w, b) in enumerate(params):
        dout, din = w.shape
        pin = din if li == 0 else _round_up(din, LANE)   # layer-0 K stays = d_in
        pout = _round_up(dout, LANE)
        w_t = jnp.pad(jnp.asarray(w, jnp.float32).T,
                      ((0, pin - din), (0, pout - dout))).astype(jnp.bfloat16)
        b_p = jnp.pad(jnp.asarray(b, jnp.float32), (0, pout - dout)).reshape(1, pout)
        tensors += [w_t, b_p]
    return tuple(tensors), d_out


def mlp_forward(x, prepared, block_b=1024):
    """x: (B, d_in) f32/bf16; prepared = prepare_params(params)."""
    tensors, d_out = prepared
    B, d_in = x.shape
    assert tensors[0].shape[0] == d_in, "prepared params do not match input width"

    # Batch tiling: large tiles amortize the ~0.35 us per-grid-step overhead;
    # small batches are split into >= 2 tiles when possible so ("parallel",)
    # can shard across both TensorCores on v7x.
    b_min = _round_up(B, SUBLANE)
    if b_min <= block_b:
        tb = max(SUBLANE, _round_up(pl.cdiv(b_min, 2), SUBLANE))
    else:
        tb = block_b
    b_pad = _round_up(b_min, tb)
    grid = (pl.cdiv(b_pad, tb),)

    # Only the batch dim is padded; the feature dim keeps its true width.
    x_p = jnp.pad(x, ((0, b_pad - B), (0, 0))).astype(jnp.bfloat16)

    in_specs = [pl.BlockSpec((tb, d_in), lambda i: (i, 0))]
    for t in tensors:
        # Full-array blocks with constant index maps: weights/biases stay
        # VMEM-resident across all batch tiles.
        in_specs.append(pl.BlockSpec(t.shape, lambda i: (0, 0)))

    out_specs = pl.BlockSpec((tb, d_out), lambda i: (i, 0))

    flops = 2 * b_pad * sum(tensors[2 * li].shape[0] * tensors[2 * li].shape[1]
                            for li in range(len(tensors) // 2))
    bytes_accessed = (int(x_p.size) * x_p.dtype.itemsize
                      + sum(int(t.size) * t.dtype.itemsize for t in tensors)
                      + b_pad * d_out * 4)

    out = pl.pallas_call(
        mlp_kernel,
        grid=grid,
        in_specs=in_specs,
        out_specs=out_specs,
        out_shape=jax.ShapeDtypeStruct((b_pad, d_out), jnp.float32),
        compiler_params=pltpu.CompilerParams(
            dimension_semantics=("parallel",)),
        cost_estimate=pl.CostEstimate(
            flops=flops, transcendentals=0, bytes_accessed=bytes_accessed),
    )(x_p, *tensors)

    return out[:B]                         # strip batch padding only


if __name__ == "__main__":
    key = jax.random.PRNGKey(0)
    batch, input_size = 8, 16
    keys = jax.random.split(key, 9)

    x = jax.random.normal(keys[0], (batch, input_size), dtype=jnp.float32)

    # Parameters with PyTorch nn.Linear default-style uniform init.
    layer_dims = [input_size, 64, 32, 16, 1]
    params = []
    for li in range(4):
        fan_in = layer_dims[li]
        bound = 1.0 / float(fan_in) ** 0.5
        w = jax.random.uniform(keys[1 + 2 * li], (layer_dims[li + 1], fan_in),
                               minval=-bound, maxval=bound, dtype=jnp.float32)
        b = jax.random.uniform(keys[2 + 2 * li], (layer_dims[li + 1],),
                               minval=-bound, maxval=bound, dtype=jnp.float32)
        params.append((w, b))

    prepared = prepare_params(params)      # one-time prep, outside the call path
    out = mlp_forward(x, prepared)
    jax.block_until_ready(out)

    # Pure-JAX f32 reference; loose tolerance since kernel matmuls use bf16.
    h = x
    for li, (w, b) in enumerate(params):
        h = h @ w.T + b
        if li < 3:
            h = jnp.maximum(h, 0.0)
    ref = h

    assert out.shape == (batch, 1)
    assert bool(jnp.all(jnp.isfinite(out)))
    assert bool(jnp.allclose(out, ref, atol=5e-2, rtol=5e-2)), (
        f"max abs err {float(jnp.max(jnp.abs(out - ref)))}")
    print("KERNEL_OK")
</pallas_src>

<mosaic_0001>
module attributes {stable_mosaic.version = 11 : i64} {
  func.func @mlp_kernel(%arg0: i32, %arg1: memref<8x16xbf16, #tpu.memory_space<vmem>>, %arg2: memref<16x128xbf16, #tpu.memory_space<vmem>>, %arg3: memref<1x128xf32, #tpu.memory_space<vmem>>, %arg4: memref<128x128xbf16, #tpu.memory_space<vmem>>, %arg5: memref<1x128xf32, #tpu.memory_space<vmem>>, %arg6: memref<128x128xbf16, #tpu.memory_space<vmem>>, %arg7: memref<1x128xf32, #tpu.memory_space<vmem>>, %arg8: memref<128x128xbf16, #tpu.memory_space<vmem>>, %arg9: memref<1x128xf32, #tpu.memory_space<vmem>>, %arg10: memref<8x1xf32, #tpu.memory_space<vmem>>) attributes {dimension_semantics = [#tpu.dimension_semantics<parallel>], iteration_bounds = array<i64: 1>, scalar_prefetch = 0 : i64, scratch_operands = 0 : i64, tpu.core_type = #tpu.core_type<tc>, window_params = [{transform_indices = @transform_0, window_bounds = array<i64: 8, 16>}, {pipeline_mode = #tpu.pipeline_mode<synchronous>, transform_indices = @transform_1, window_bounds = array<i64: 16, 128>}, {pipeline_mode = #tpu.pipeline_mode<synchronous>, transform_indices = @transform_2, window_bounds = array<i64: 1, 128>}, {pipeline_mode = #tpu.pipeline_mode<synchronous>, transform_indices = @transform_3, window_bounds = array<i64: 128, 128>}, {pipeline_mode = #tpu.pipeline_mode<synchronous>, transform_indices = @transform_4, window_bounds = array<i64: 1, 128>}, {pipeline_mode = #tpu.pipeline_mode<synchronous>, transform_indices = @transform_5, window_bounds = array<i64: 128, 128>}, {pipeline_mode = #tpu.pipeline_mode<synchronous>, transform_indices = @transform_6, window_bounds = array<i64: 1, 128>}, {pipeline_mode = #tpu.pipeline_mode<synchronous>, transform_indices = @transform_7, window_bounds = array<i64: 128, 128>}, {pipeline_mode = #tpu.pipeline_mode<synchronous>, transform_indices = @transform_8, window_bounds = array<i64: 1, 128>}, {transform_indices = @transform_9, window_bounds = array<i64: 8, 1>}]} {
    %c0 = arith.constant 0 : index
    %c0_0 = arith.constant 0 : index
    %0 = vector.load %arg1[%c0, %c0_0] : memref<8x16xbf16, #tpu.memory_space<vmem>>, vector<8x16xbf16>
    %c0_1 = arith.constant 0 : index
    %c0_2 = arith.constant 0 : index
    %1 = vector.load %arg2[%c0_1, %c0_2] : memref<16x128xbf16, #tpu.memory_space<vmem>>, vector<16x128xbf16>
    %cst = arith.constant dense<0.000000e+00> : vector<8x128xf32>
    %2 = tpu.matmul %0, %1, %cst {dimension_numbers = #tpu.dot_dimension_numbers<[1], [0], [0], [1], [0, 0, 1, 1], [], []>} : vector<8x16xbf16>, vector<16x128xbf16>, vector<8x128xf32> -> vector<8x128xf32>
    %c0_3 = arith.constant 0 : index
    %c0_4 = arith.constant 0 : index
    %3 = vector.load %arg3[%c0_3, %c0_4] : memref<1x128xf32, #tpu.memory_space<vmem>>, vector<1x128xf32>
    %4 = vector.broadcast %3 : vector<1x128xf32> to vector<8x128xf32>
    %5 = arith.addf %2, %4 : vector<8x128xf32>
    %6 = arith.truncf %5 : vector<8x128xf32> to vector<8x128xbf16>
    %cst_5 = arith.constant 0.000000e+00 : bf16
    %7 = vector.broadcast %cst_5 : bf16 to vector<8x128xbf16>
    %8 = arith.maximumf %6, %7 : vector<8x128xbf16>
    %c0_6 = arith.constant 0 : index
    %c0_7 = arith.constant 0 : index
    %9 = vector.load %arg4[%c0_6, %c0_7] : memref<128x128xbf16, #tpu.memory_space<vmem>>, vector<128x128xbf16>
    %cst_8 = arith.constant dense<0.000000e+00> : vector<8x128xf32>
    %10 = tpu.matmul %8, %9, %cst_8 {dimension_numbers = #tpu.dot_dimension_numbers<[1], [0], [0], [1], [0, 0, 1, 1], [], []>} : vector<8x128xbf16>, vector<128x128xbf16>, vector<8x128xf32> -> vector<8x128xf32>
    %c0_9 = arith.constant 0 : index
    %c0_10 = arith.constant 0 : index
    %11 = vector.load %arg5[%c0_9, %c0_10] : memref<1x128xf32, #tpu.memory_space<vmem>>, vector<1x128xf32>
    %12 = vector.broadcast %11 : vector<1x128xf32> to vector<8x128xf32>
    %13 = arith.addf %10, %12 : vector<8x128xf32>
    %14 = arith.truncf %13 : vector<8x128xf32> to vector<8x128xbf16>
    %cst_11 = arith.constant 0.000000e+00 : bf16
    %15 = vector.broadcast %cst_11 : bf16 to vector<8x128xbf16>
    %16 = arith.maximumf %14, %15 : vector<8x128xbf16>
    %c0_12 = arith.constant 0 : index
    %c0_13 = arith.constant 0 : index
    %17 = vector.load %arg6[%c0_12, %c0_13] : memref<128x128xbf16, #tpu.memory_space<vmem>>, vector<128x128xbf16>
    %cst_14 = arith.constant dense<0.000000e+00> : vector<8x128xf32>
    %18 = tpu.matmul %16, %17, %cst_14 {dimension_numbers = #tpu.dot_dimension_numbers<[1], [0], [0], [1], [0, 0, 1, 1], [], []>} : vector<8x128xbf16>, vector<128x128xbf16>, vector<8x128xf32> -> vector<8x128xf32>
    %c0_15 = arith.constant 0 : index
    %c0_16 = arith.constant 0 : index
    %19 = vector.load %arg7[%c0_15, %c0_16] : memref<1x128xf32, #tpu.memory_space<vmem>>, vector<1x128xf32>
    %20 = vector.broadcast %19 : vector<1x128xf32> to vector<8x128xf32>
    %21 = arith.addf %18, %20 : vector<8x128xf32>
    %22 = arith.truncf %21 : vector<8x128xf32> to vector<8x128xbf16>
    %cst_17 = arith.constant 0.000000e+00 : bf16
    %23 = vector.broadcast %cst_17 : bf16 to vector<8x128xbf16>
    %24 = arith.maximumf %22, %23 : vector<8x128xbf16>
    %c0_18 = arith.constant 0 : index
    %c0_19 = arith.constant 0 : index
    %25 = vector.load %arg8[%c0_18, %c0_19] : memref<128x128xbf16, #tpu.memory_space<vmem>>, vector<128x128xbf16>
    %cst_20 = arith.constant dense<0.000000e+00> : vector<8x128xf32>
    %26 = tpu.matmul %24, %25, %cst_20 {dimension_numbers = #tpu.dot_dimension_numbers<[1], [0], [0], [1], [0, 0, 1, 1], [], []>} : vector<8x128xbf16>, vector<128x128xbf16>, vector<8x128xf32> -> vector<8x128xf32>
    %c0_21 = arith.constant 0 : index
    %c0_22 = arith.constant 0 : index
    %27 = vector.load %arg9[%c0_21, %c0_22] : memref<1x128xf32, #tpu.memory_space<vmem>>, vector<1x128xf32>
    %28 = vector.broadcast %27 : vector<1x128xf32> to vector<8x128xf32>
    %29 = arith.addf %26, %28 : vector<8x128xf32>
    %30 = vector.extract_strided_slice %29 {offsets = [0, 0], sizes = [8, 1], strides = [1, 1]} : vector<8x128xf32> to vector<8x1xf32>
    %c0_23 = arith.constant 0 : index
    %c0_24 = arith.constant 0 : index
    %31 = vector.load %arg10[%c0_23, %c0_24] : memref<8x1xf32, #tpu.memory_space<vmem>>, vector<8x1xf32>
    tpu.vector_store %arg10[%c0_23, %c0_24], %30 {strides = array<i32>} : memref<8x1xf32, #tpu.memory_space<vmem>>, vector<8x1xf32>,
    return
  }
  func.func @transform_0(%arg0: i32) -> (i32, i32) {
    %c0_i32 = arith.constant 0 : i32
    %c0_i32_0 = arith.constant 0 : i32
    return %arg0, %c0_i32 : i32, i32
  }
  func.func @transform_1(%arg0: i32) -> (i32, i32) {
    %c0_i32 = arith.constant 0 : i32
    %c0_i32_0 = arith.constant 0 : i32
    %c0_i32_1 = arith.constant 0 : i32
    return %c0_i32, %c0_i32_0 : i32, i32
  }
  func.func @transform_2(%arg0: i32) -> (i32, i32) {
    %c0_i32 = arith.constant 0 : i32
    %c0_i32_0 = arith.constant 0 : i32
    %c0_i32_1 = arith.constant 0 : i32
    return %c0_i32, %c0_i32_0 : i32, i32
  }
  func.func @transform_3(%arg0: i32) -> (i32, i32) {
    %c0_i32 = arith.constant 0 : i32
    %c0_i32_0 = arith.constant 0 : i32
    %c0_i32_1 = arith.constant 0 : i32
    return %c0_i32, %c0_i32_0 : i32, i32
  }
  func.func @transform_4(%arg0: i32) -> (i32, i32) {
    %c0_i32 = arith.constant 0 : i32
    %c0_i32_0 = arith.constant 0 : i32
    %c0_i32_1 = arith.constant 0 : i32
    return %c0_i32, %c0_i32_0 : i32, i32
  }
  func.func @transform_5(%arg0: i32) -> (i32, i32) {
    %c0_i32 = arith.constant 0 : i32
    %c0_i32_0 = arith.constant 0 : i32
    %c0_i32_1 = arith.constant 0 : i32
    return %c0_i32, %c0_i32_0 : i32, i32
  }
  func.func @transform_6(%arg0: i32) -> (i32, i32) {
    %c0_i32 = arith.constant 0 : i32
    %c0_i32_0 = arith.constant 0 : i32
    %c0_i32_1 = arith.constant 0 : i32
    return %c0_i32, %c0_i32_0 : i32, i32
  }
  func.func @transform_7(%arg0: i32) -> (i32, i32) {
    %c0_i32 = arith.constant 0 : i32
    %c0_i32_0 = arith.constant 0 : i32
    %c0_i32_1 = arith.constant 0 : i32
    return %c0_i32, %c0_i32_0 : i32, i32
  }
  func.func @transform_8(%arg0: i32) -> (i32, i32) {
    %c0_i32 = arith.constant 0 : i32
    %c0_i32_0 = arith.constant 0 : i32
    %c0_i32_1 = arith.constant 0 : i32
    return %c0_i32, %c0_i32_0 : i32, i32
  }
  func.func @transform_9(%arg0: i32) -> (i32, i32) {
    %c0_i32 = arith.constant 0 : i32
    %c0_i32_0 = arith.constant 0 : i32
    return %arg0, %c0_i32 : i32, i32
  }
}

</mosaic_0001>

<bundles_post_ra>
// kernel: tpu_custom_call.1
= control target key start
LH: loop header
LB: loop body
LE: loop exit
PB: predicated region body
PF: predicated region fallthrough
CT: control target
= control target key end

     0   :  { %14 = vsyncpa [#allocation3], 0  ;;  %s963_s0 = inlined_call_operand.hbm [shape: bf16[8,16], index: 0, kind: input, shape index: {}]   ;;  %s964_s1 = inlined_call_operand.hbm [shape: bf16[16,128], index: 1, kind: input, shape index: {}]   ;;  %s965_s2 = inlined_call_operand.vmem [shape: f32[1,128], index: 2, kind: input, shape index: {}]   ;;  %s966_s3 = inlined_call_operand.hbm [shape: bf16[128,128], index: 3, kind: input, shape index: {}]   ;;  %s967_s4 = inlined_call_operand.vmem [shape: f32[1,128], index: 4, kind: input, shape index: {}]   ;;  %s968_s5 = inlined_call_operand.hbm [shape: bf16[128,128], index: 5, kind: input, shape index: {}]   ;;  %s969_s6 = inlined_call_operand.vmem [shape: f32[1,128], index: 6, kind: input, shape index: {}]   ;;  %s970_s7 = inlined_call_operand.hbm [shape: bf16[128,128], index: 7, kind: input, shape index: {}]   ;;  %s971_s8 = inlined_call_operand.vmem [shape: f32[1,128], index: 8, kind: input, shape index: {}]   ;;  %s972_s9 = inlined_call_operand.vmem [shape: f32[8,1], index: 9, kind: output, shape index: {}]  }
   0x1   :  { %15 = vsyncpa [#allocation5], 0 }
   0x2   :  { %16 = vsyncpa [#allocation8], 0  ;;  %s783_s30 = smov [#allocation4]   ;;  %s667_s13 = scalar_lea.hbm %s964_s1, 128 }
   0x3   :  { %s32_s10 = sshll.u32 %s783_s30, 4  ;;  %p668_p0 = scmp.ne.s32.totalorder %s964_s1, %s667_s13  ;;  %s33_s10 = int_to_ptr.vmem [resolvable:$true] %s32_s10 }
   0x4   :  { %p671_p1 = scmp.lt.u32.totalorder %s667_s13, %s964_s1 }
   0x6   :  { %p673_p2 = pnand %p671_p1, %p668_p0 }
   0x8   :  { %676 = shalt.err (!%p673_p2)
}
   0x9   :  { %s677_s18 = scalar_lea.vmem %s33_s10, 128  ;;  %p682_p4 = scmp.lt.s32.totalorder %s33_s10, %s33_s10 }
   0xa   :  { %p678_p3 = scmp.ne.s32.totalorder %s33_s10, %s677_s18  ;;  %p683_p5 = scmp.lt.s32.totalorder %s677_s18, %s677_s18 }
   0xc   :  { %p684_p6 = por %p683_p5, %p682_p4 }
   0xe   :  { %p685_p7 = pnand %p684_p6, %p678_p3 }
  0x10   :  { %688 = shalt.err (!%p685_p7)
}
  0x11   :  { %s784_s19 = smov 64   ;;  %s785_s20 = smov 4  }
  0x12   :  { %38 = dma.hbm_to_vmem [thread:$0]  %s964_s1, 128, %s33_s10, [#allocation5], %s784_s19, %s784_s19, %s785_s20  }
  0x13   :  { %s786_s23 = smov [#allocation7]   ;;  %s787_s25 = smov [#allocation2]  }
  0x14   :  { %s60_s24 = sshll.u32 %s786_s23, 4  ;;  %s23_s26 = sshll.u32 %s787_s25, 4  ;;  %s61_s24 = int_to_ptr.vmem [resolvable:$true] %s60_s24  ;;  %s24_s26 = int_to_ptr.vmem [resolvable:$true] %s23_s26 }
  0x15   :  { %s689_s29 = scalar_lea.hbm %s968_s5, 1024 }
  0x16   :  { %p690_p8 = scmp.ne.s32.totalorder %s968_s5, %s689_s29  ;;  %p693_p9 = scmp.lt.u32.totalorder %s689_s29, %s968_s5 }
  0x18   :  { %p695_p10 = pnand %p693_p9, %p690_p8 }
  0x1a   :  { %698 = shalt.err (!%p695_p10)
}
  0x1b   :  { %s699_s1 = scalar_lea.vmem %s61_s24, 1024  ;;  %p704_p12 = scmp.lt.s32.totalorder %s61_s24, %s61_s24 }
  0x1c   :  { %p700_p11 = scmp.ne.s32.totalorder %s61_s24, %s699_s1  ;;  %p705_p13 = scmp.lt.s32.totalorder %s699_s1, %s699_s1 }
  0x1e   :  { %p706_p0 = por %p705_p13, %p704_p12 }
  0x20   :  { %p707_p1 = pnand %p706_p0, %p700_p11 }
  0x22   :  { %710 = shalt.err (!%p707_p1)
}
  0x23   :  { %66 = dma.hbm_to_vmem [thread:$0]  %s968_s5, 1024, %s61_s24, [#allocation8], %s784_s19, %s784_s19, %s785_s20  }
  0x24   :  { %s711_s17 = scalar_lea.hbm %s963_s0, 64 }
  0x25   :  { %p712_p2 = scmp.ne.s32.totalorder %s963_s0, %s711_s17  ;;  %p715_p3 = scmp.lt.u32.totalorder %s711_s17, %s963_s0 }
  0x27   :  { %p717_p4 = pnand %p715_p3, %p712_p2 }
  0x29   :  { %720 = shalt.err (!%p717_p4)
}
  0x2a   :  { %s721_s25 = scalar_lea.vmem %s24_s26, 64  ;;  %p726_p6 = scmp.lt.s32.totalorder %s24_s26, %s24_s26 }
  0x2b   :  { %p722_p5 = scmp.ne.s32.totalorder %s24_s26, %s721_s25  ;;  %p727_p7 = scmp.lt.s32.totalorder %s721_s25, %s721_s25 }
  0x2d   :  { %p728_p8 = por %p727_p7, %p726_p6 }
  0x2f   :  { %p729_p9 = pnand %p728_p8, %p722_p5 }
  0x31   :  { %732 = shalt.err (!%p729_p9)
}
  0x32   :  { %26 = dma.hbm_to_vmem [thread:$0]  %s963_s0, 64, %s24_s26, [#allocation3]  }
  0x33   :  { %s788_s27 = smov [#allocation6]   ;;  %s789_s29 = smov [#allocation9]  }
  0x34   :  { %s46_s28 = sshll.u32 %s788_s27, 4  ;;  %s74_s30 = sshll.u32 %s789_s29, 4  ;;  %s47_s28 = int_to_ptr.vmem [resolvable:$true] %s46_s28  ;;  %s75_s30 = int_to_ptr.vmem [resolvable:$true] %s74_s30 }
  0x35   :  { %s733_s13 = scalar_lea.hbm %s966_s3, 1024 }
  0x36   :  { %p734_p10 = scmp.ne.s32.totalorder %s966_s3, %s733_s13  ;;  %p737_p11 = scmp.lt.u32.totalorder %s733_s13, %s966_s3 }
  0x38   :  { %p739_p12 = pnand %p737_p11, %p734_p10 }
  0x3a   :  { %742 = shalt.err (!%p739_p12)
}
  0x3b   :  { %s743_s0 = scalar_lea.vmem %s47_s28, 1024  ;;  %p748_p0 = scmp.lt.s32.totalorder %s47_s28, %s47_s28 }
  0x3c   :  { %p744_p13 = scmp.ne.s32.totalorder %s47_s28, %s743_s0  ;;  %p749_p1 = scmp.lt.s32.totalorder %s743_s0, %s743_s0 }
  0x3e   :  { %p750_p2 = por %p749_p1, %p748_p0 }
  0x40   :  { %p751_p3 = pnand %p750_p2, %p744_p13 }
  0x42   :  { %754 = shalt.err (!%p751_p3)
}
  0x43   :  { %52 = dma.hbm_to_vmem [thread:$0]  %s966_s3, 1024, %s47_s28, [#allocation5], %s784_s19, %s784_s19, %s785_s20  }
  0x44   :  { %s755_s21 = scalar_lea.hbm %s970_s7, 1024 }
  0x45   :  { %p756_p4 = scmp.ne.s32.totalorder %s970_s7, %s755_s21  ;;  %p759_p5 = scmp.lt.u32.totalorder %s755_s21, %s970_s7 }
  0x47   :  { %p761_p6 = pnand %p759_p5, %p756_p4 }
  0x49   :  { %764 = shalt.err (!%p761_p6)
}
  0x4a   :  { %s765_s24 = scalar_lea.vmem %s75_s30, 1024  ;;  %p770_p8 = scmp.lt.s32.totalorder %s75_s30, %s75_s30 }
  0x4b   :  { %p766_p7 = scmp.ne.s32.totalorder %s75_s30, %s765_s24  ;;  %p771_p9 = scmp.lt.s32.totalorder %s765_s24, %s765_s24 }
  0x4d   :  { %p772_p10 = por %p771_p9, %p770_p8 }
  0x4f   :  { %p773_p11 = pnand %p772_p10, %p766_p7 }
  0x51   :  { %776 = shalt.err (!%p773_p11)
}
  0x52   :  { %80 = dma.hbm_to_vmem [thread:$0]  %s970_s7, 1024, %s75_s30, [#allocation8], %s784_s19, %s784_s19, %s785_s20  }
  0x53   :  { %777 = dma.done.wait [#allocation3], 64  }
  0x54   :  { %778 = vsyncadd [#allocation3], 4294967232 }
  0x55   :  { %779 = dma.done.wait [#allocation5], 1152  }
  0x56   :  { %780 = vsyncadd [#allocation5], 4294966144 }
  0x57   :  { %781 = dma.done.wait [#allocation8], 2048  }
  0x58   :  { %782 = vsyncadd [#allocation8], 4294965248  ;;  %v790_v0 = vmov 0.0   ;;  %vm791_vm0 = vmmov 0   ;;  %v642_v1 = vld [vmem:[#allocation4] sm:$0xff]   ;;  %vm115_vm1 = vcmask 130048  }
  0x59   :  { %566 = vmatprep.subr.bf16.mxu0 %v790_v0  ;;  %568 = vmatprep.mubr.msk.bf16.mxu0 %vm791_vm0, %v790_v0  ;;  %v99_v2 = vld [vmem:[#allocation2] sm:$0xf]  ;;  %v643_v3 = vld [vmem:[#allocation6] sm:$0xff]   ;;  %v644_v4 = vld [vmem:[#allocation6 + $0x8] sm:$0xff]   ;;  %v792_v24 = vmov 0   ;;  %vm498_vm2 = vcmask 7168  }
  0x5a   :  { %572 = vmatprep.subr.bf16.mxu1 %v790_v0  ;;  %588 = vmatprep.mubr.msk.bf16.mxu1 %vm791_vm0, %v790_v0  ;;  %v645_v5 = vld [vmem:[#allocation6 + $0x10] sm:$0xff]   ;;  %v646_v6 = vld [vmem:[#allocation6 + $0x18] sm:$0xff]   ;;  %v647_v7 = vld [vmem:[#allocation6 + $0x20] sm:$0xff]  }
  0x5b   :  { %567 = vmatpush3.bf16.msra.mxu0 %v642_v1  ;;  %573 = vmatpush3.bf16.msra.mxu1 %v643_v3  ;;  %v648_v8 = vld [vmem:[#allocation6 + $0x28] sm:$0xff]   ;;  %v649_v9 = vld [vmem:[#allocation6 + $0x30] sm:$0xff]   ;;  %v650_v10 = vld [vmem:[#allocation6 + $0x38] sm:$0xff]  }
  0x5c   :  { %592 = vmatprep.subr.bf16.mxu0 %v790_v0  ;;  %574 = vmatprep.subr.bf16.mxu1 %v790_v0  ;;  %v651_v11 = vld [vmem:[#allocation7] sm:$0xff]   ;;  %v652_v12 = vld [vmem:[#allocation7 + $0x8] sm:$0xff]   ;;  %v653_v13 = vld [vmem:[#allocation7 + $0x10] sm:$0xff]  }
  0x5d   :  { %v654_v14 = vld [vmem:[#allocation7 + $0x18] sm:$0xff]   ;;  %v655_v15 = vld [vmem:[#allocation7 + $0x20] sm:$0xff]   ;;  %v656_v16 = vld [vmem:[#allocation7 + $0x28] sm:$0xff]  }
  0x5e   :  { %569 = vmatmul.mubr.msk.bf16.vlgmr.msra.gmra.mrb[0].mxu0 %vm115_vm1, %v99_v2  ;;  %v507_v17 = vld [vmem:[%s965_s2] ss:$0 sm:$0xff]  ;;  %v657_v26 = vld [vmem:[#allocation7 + $0x30] sm:$0xff]   ;;  %v658_v27 = vld [vmem:[#allocation7 + $0x38] sm:$0xff]  }
  0x5f   :  { %608 = vmatprep.mubr.msk.bf16.mxu0 %vm791_vm0, %v790_v0  ;;  %575 = vmatpush3.bf16.msra.mxu1 %v644_v4  ;;  %v659_v28 = vld [vmem:[#allocation9] sm:$0xff]   ;;  %v660_v29 = vld [vmem:[#allocation9 + $0x8] sm:$0xff]   ;;  %v661_v30 = vld [vmem:[#allocation9 + $0x10] sm:$0xff]  }
  0x60   :  { %576 = vmatprep.subr.bf16.mxu1 %v790_v0  ;;  %593 = vmatpush3.bf16.msra.mxu0 %v651_v11  ;;  %v662_v31 = vld [vmem:[#allocation9 + $0x18] sm:$0xff]   ;;  %v663_v32 = vld [vmem:[#allocation9 + $0x20] sm:$0xff]   ;;  %v664_v33 = vld [vmem:[#allocation9 + $0x28] sm:$0xff]  }
  0x61   :  { %594 = vmatprep.subr.bf16.mxu0 %v790_v0  ;;  %v510_v34 = vld [vmem:[%s967_s4] ss:$0 sm:$0xff]  ;;  %v665_v42 = vld [vmem:[#allocation9 + $0x30] sm:$0xff]   ;;  %v666_v43 = vld [vmem:[#allocation9 + $0x38] sm:$0xff]  }
  0x62   :  { %v519_v44 = vld [vmem:[%s969_s6] ss:$0 sm:$0xff] }
  0x63   :  { %577 = vmatpush3.bf16.msra.mxu1 %v645_v5  ;;  %v528_v52 = vld [vmem:[%s971_s8] ss:$0 sm:$0xff] }
  0x64   :  { %578 = vmatprep.subr.bf16.mxu1 %v790_v0  ;;  %595 = vmatpush3.bf16.msra.mxu0 %v652_v12 }
  0x65   :  { %596 = vmatprep.subr.bf16.mxu0 %v790_v0 }
  0x67   :  { %579 = vmatpush3.bf16.msra.mxu1 %v646_v6 }
  0x68   :  { %580 = vmatprep.subr.bf16.mxu1 %v790_v0  ;;  %597 = vmatpush3.bf16.msra.mxu0 %v653_v13 }
  0x69   :  { %598 = vmatprep.subr.bf16.mxu0 %v790_v0 }
  0x6b   :  { %581 = vmatpush3.bf16.msra.mxu1 %v647_v7 }
  0x6c   :  { %582 = vmatprep.subr.bf16.mxu1 %v790_v0  ;;  %599 = vmatpush3.bf16.msra.mxu0 %v654_v14 }
  0x6d   :  { %600 = vmatprep.subr.bf16.mxu0 %v790_v0 }
  0x6f   :  { %583 = vmatpush3.bf16.msra.mxu1 %v648_v8 }
  0x70   :  { %584 = vmatprep.subr.bf16.mxu1 %v790_v0  ;;  %601 = vmatpush3.bf16.msra.mxu0 %v655_v15 }
  0x71   :  { %602 = vmatprep.subr.bf16.mxu0 %v790_v0 }
  0x73   :  { %585 = vmatpush3.bf16.msra.mxu1 %v649_v9 }
  0x74   :  { %586 = vmatprep.subr.bf16.mxu1 %v790_v0  ;;  %603 = vmatpush3.bf16.msra.mxu0 %v656_v16 }
  0x75   :  { %604 = vmatprep.subr.bf16.mxu0 %v790_v0 }
  0x77   :  { %587 = vmatpush3.bf16.msra.mxu1 %v650_v10 }
  0x78   :  { %612 = vmatprep.subr.bf16.mxu1 %v790_v0  ;;  %605 = vmatpush3.bf16.msra.mxu0 %v657_v26 }
  0x79   :  { %606 = vmatprep.subr.bf16.mxu0 %v790_v0 }
  0x7c   :  { %607 = vmatpush3.bf16.msra.mxu0 %v658_v27 }
 0x131   :  { %v153_v18 = vpop.f32.mrb[0].mxu0 }
 0x132   :  { %v154_v19 = vadd.f32 %v507_v17, %v153_v18  ;;  %v570_v20 = vpop.f32.mrb[1].mxu0 }
 0x133   :  { %v156_v21 = vpop.f32.mrb[2].mxu0 }
 0x134   :  { %v159_v22 = vpack.c.bf16 %v154_v19, %v154_v19  ;;  %v571_v23 = vpop.f32.mrb[3].mxu0 }
 0x136   :  { %v160_v25 = vmax.bf16 %v792_v24, %v159_v22 }
 0x138   :  { %589 = vmatmul.mubr.bf16.vlgmr.msra.gmra.mrb[0].mxu1 %v160_v25 }
 0x139   :  { %628 = vmatprep.mubr.msk.bf16.mxu1 %vm791_vm0, %v790_v0  ;;  %613 = vmatpush3.bf16.msra.mxu1 %v659_v28 }
 0x13a   :  { %614 = vmatprep.subr.bf16.mxu1 %v790_v0 }
 0x13d   :  { %615 = vmatpush3.bf16.msra.mxu1 %v660_v29 }
 0x13e   :  { %616 = vmatprep.subr.bf16.mxu1 %v790_v0 }
 0x141   :  { %617 = vmatpush3.bf16.msra.mxu1 %v661_v30 }
 0x142   :  { %618 = vmatprep.subr.bf16.mxu1 %v790_v0 }
 0x145   :  { %619 = vmatpush3.bf16.msra.mxu1 %v662_v31 }
 0x146   :  { %620 = vmatprep.subr.bf16.mxu1 %v790_v0 }
 0x149   :  { %621 = vmatpush3.bf16.msra.mxu1 %v663_v32 }
 0x14a   :  { %622 = vmatprep.subr.bf16.mxu1 %v790_v0 }
 0x14d   :  { %623 = vmatpush3.bf16.msra.mxu1 %v664_v33 }
 0x14e   :  { %624 = vmatprep.subr.bf16.mxu1 %v790_v0 }
 0x151   :  { %625 = vmatpush3.bf16.msra.mxu1 %v665_v42 }
 0x152   :  { %626 = vmatprep.subr.bf16.mxu1 %v790_v0 }
 0x155   :  { %627 = vmatpush3.bf16.msra.mxu1 %v666_v43 }
 0x20b   :  { %v266_v35 = vpop.f32.mrb[0].mxu1 }
 0x20c   :  { %v267_v36 = vadd.f32 %v510_v34, %v266_v35  ;;  %v590_v37 = vpop.f32.mrb[1].mxu1 }
 0x20d   :  { %v269_v38 = vpop.f32.mrb[2].mxu1 }
 0x20e   :  { %v272_v39 = vpack.c.bf16 %v267_v36, %v267_v36  ;;  %v591_v40 = vpop.f32.mrb[3].mxu1 }
 0x210   :  { %v273_v41 = vmax.bf16 %v792_v24, %v272_v39 }
 0x212   :  { %609 = vmatmul.mubr.bf16.vlgmr.msra.gmra.mrb[4].mxu0 %v273_v41 }
 0x2e5   :  { %v379_v45 = vpop.f32.mrb[4].mxu0 }
 0x2e6   :  { %v380_v46 = vadd.f32 %v519_v44, %v379_v45  ;;  %v610_v47 = vpop.f32.mrb[5].mxu0 }
 0x2e7   :  { %v382_v48 = vpop.f32.mrb[6].mxu0 }
 0x2e8   :  { %v385_v49 = vpack.c.bf16 %v380_v46, %v380_v46  ;;  %v611_v50 = vpop.f32.mrb[7].mxu0 }
 0x2ea   :  { %v386_v51 = vmax.bf16 %v792_v24, %v385_v49 }
 0x2ec   :  { %629 = vmatmul.mubr.bf16.vlgmr.msra.gmra.mrb[4].mxu1 %v386_v51 }
 0x3bf   :  { %v492_v53 = vpop.f32.mrb[4].mxu1 }
 0x3c0   :  { %v493_v54 = vadd.f32 %v528_v52, %v492_v53  ;;  %v630_v55 = vpop.f32.mrb[5].mxu1 }
 0x3c1   :  { %v495_v56 = vpop.f32.mrb[6].mxu1 }
 0x3c2   :  { %499 = vst.msk [vmem:[%s972_s9] sm:$0xff] %vm498_vm2, %v493_v54  ;;  %v631_v57 = vpop.f32.mrb[7].mxu1 }
 0x3c3   :  { %504 = vsyncpa [#allocation3], 1 }
 0x3c4   :  { %505 = vsyncpa [#allocation5], 1 }
 0x3c5   :  { %506 = vsyncpa [#allocation8], 1 }

</bundles_post_ra>
